<compile_context>
chip_gen: v7x
topology: tpu7x:2x2x1
jax: 0.10.0
libtpu: 0.0.40
codegen_flags: <defaults>
</compile_context>

<pallas_src>
import functools

import jax
import jax.numpy as jnp
from jax.experimental import pallas as pl
from jax.experimental.pallas import tpu as pltpu

HIDDEN = 256
_MISH_CUTOFF = 20.0   # for x >= cutoff, u/(u+2) rounds to exactly 1 -> mish(x)==x
_SUBLANE = 16         # batch-tile granularity (bf16 sublane packing)


def _round_up(x, m):
    return ((x + m - 1) // m) * m


def _tpu_kind():
    try:
        return jax.devices()[0].device_kind.lower()
    except Exception:
        return ""


def _mish_compute_dtype():
    """bf16 Mish on bf16-capable VPU/EUP chips (v6e/v7x); f32 elsewhere (v5e)."""
    kind = _tpu_kind()
    return jnp.bfloat16 if ("v6" in kind or "v7" in kind) else jnp.float32


def _min_parallel_grid_steps():
    """v7x has 2 TensorCores sharing the 'parallel' grid axis."""
    return 2 if "v7" in _tpu_kind() else 1


def _mish(x, *, approx_recip):
    """mish(x) = x * tanh(softplus(x)) = x * u/(u+2),  u = e^x (e^x + 2).

    One EUP exp (+ one EUP approx reciprocal on the in-kernel f32 path) instead
    of exp+log1p+tanh.  The exp clamp keeps the value finite and makes u/(u+2)
    round to exactly 1 for x >= cutoff, so no compare/select is needed.
    Runs in whatever dtype `x` carries (bf16 on v6e/v7x, f32 on v5e).
    """
    t = jnp.exp(jnp.minimum(x, _MISH_CUTOFF))
    u = t * (t + 2.0)
    if approx_recip and x.dtype == jnp.float32:
        return x * u * pl.reciprocal(u + 2.0, approx=True)
    return x * (u / (u + 2.0))


def decoder_kernel(s_ref, z_ref, w1s_ref, w1z_ref, b1_ref, w2_ref, b2_ref,
                   w3_ref, b3_ref, w4_ref, b4_ref, o_ref, *,
                   max_action, mish_dtype):
    def mish(v):
        return _mish(v.astype(mish_dtype), approx_recip=True)

    # Fused concat: cat([s, z], 1) @ W1 == s @ W1[:state_dim] + z @ W1[state_dim:]
    sb = s_ref[...].astype(jnp.bfloat16)
    zb = z_ref[...].astype(jnp.bfloat16)
    h = mish(jnp.dot(sb, w1s_ref[...], preferred_element_type=jnp.float32)
             + jnp.dot(zb, w1z_ref[...], preferred_element_type=jnp.float32)
             + b1_ref[...]).astype(jnp.bfloat16)
    h = mish(jnp.dot(h, w2_ref[...], preferred_element_type=jnp.float32)
             + b2_ref[...]).astype(jnp.bfloat16)
    h = mish(jnp.dot(h, w3_ref[...], preferred_element_type=jnp.float32)
             + b3_ref[...]).astype(jnp.bfloat16)
    a = (jnp.dot(h, w4_ref[...], preferred_element_type=jnp.float32)
         + b4_ref[...])
    o_ref[...] = jnp.clip(a, -max_action, max_action)


def init_decoder_params(key, state_dim, action_dim, hidden=HIDDEN):
    """Deterministic PyTorch-Linear-style init: U(-1/sqrt(fan_in), 1/sqrt(fan_in))."""
    input_dim = state_dim + action_dim
    dims = [(input_dim, hidden), (hidden, hidden), (hidden, hidden),
            (hidden, action_dim)]
    params = {}
    for i, (fan_in, fan_out) in enumerate(dims, start=1):
        key, kw, kb = jax.random.split(key, 3)
        bound = 1.0 / jnp.sqrt(float(fan_in))
        params[f"w{i}"] = jax.random.uniform(
            kw, (fan_in, fan_out), jnp.float32, -bound, bound)
        params[f"b{i}"] = jax.random.uniform(
            kb, (1, fan_out), jnp.float32, -bound, bound)
    return params


def prepare_decoder_params(params, state_dim):
    """One-time prep: split W1 for the fused concat and cast weights to bf16.

    bf16 weights halve the HBM->VMEM DMA bytes (the dominant per-call cost for
    small RL batches); dots still accumulate in f32 on the MXU.  Biases stay
    f32 (negligible bytes; added to the f32 accumulator).  bf16 is portable
    across v5e/v6e/v7x (int8 would not hit the MXU on v7x).
    """
    bf16 = jnp.bfloat16
    return {
        "w1s": params["w1"][:state_dim].astype(bf16),
        "w1z": params["w1"][state_dim:].astype(bf16),
        "b1": params["b1"].astype(jnp.float32),
        "w2": params["w2"].astype(bf16),
        "b2": params["b2"].astype(jnp.float32),
        "w3": params["w3"].astype(bf16),
        "b3": params["b3"].astype(jnp.float32),
        "w4": params["w4"].astype(bf16),
        "b4": params["b4"].astype(jnp.float32),
    }


def decoder_forward(z, s, prepared, max_action, *, batch_tile=1024):
    s = s.astype(jnp.float32)
    z = z.astype(jnp.float32)
    B, state_dim = s.shape
    z_dim = z.shape[1]
    out_dim = prepared["w4"].shape[1]

    mish_dtype = _mish_compute_dtype()
    min_steps = _min_parallel_grid_steps()

    # Tile choice: few, full tiles (per-grid-step overhead ~0.35us dominates the
    # MXU work here).  On v7x force >=2 steps for large batches so both TCs run.
    padded_b = _round_up(max(B, 1), _SUBLANE)
    steps = max(pl.cdiv(padded_b, batch_tile), 1)
    if min_steps > 1 and padded_b >= 128:
        steps = max(steps, min_steps)
    tb = _round_up(pl.cdiv(padded_b, steps), _SUBLANE)
    grid = pl.cdiv(B, tb)  # ragged last block: OOB rows are independent & dropped

    def const_spec(arr):
        nd = arr.ndim
        # Constant index_map -> weights/biases stay VMEM-resident across steps.
        return pl.BlockSpec(arr.shape, lambda i, _nd=nd: (0,) * _nd)

    in_specs = [
        pl.BlockSpec((tb, state_dim), lambda i: (i, 0)),
        pl.BlockSpec((tb, z_dim), lambda i: (i, 0)),
        const_spec(prepared["w1s"]),
        const_spec(prepared["w1z"]),
        const_spec(prepared["b1"]),
        const_spec(prepared["w2"]),
        const_spec(prepared["b2"]),
        const_spec(prepared["w3"]),
        const_spec(prepared["b3"]),
        const_spec(prepared["w4"]),
        const_spec(prepared["b4"]),
    ]
    out_spec = pl.BlockSpec((tb, out_dim), lambda i: (i, 0))

    # Advisory cost hint so XLA can overlap this small custom call.
    input_dim = state_dim + z_dim
    weight_bytes = sum(int(v.size) * v.dtype.itemsize for v in prepared.values())
    flops = 2 * B * HIDDEN * (input_dim + 2 * HIDDEN + out_dim) + 8 * B * HIDDEN * 3
    transcendentals = 2 * 3 * B * HIDDEN   # exp + reciprocal per Mish element
    bytes_accessed = weight_bytes + s.nbytes + z.nbytes + B * out_dim * 4

    kernel = functools.partial(decoder_kernel, max_action=float(max_action),
                               mish_dtype=mish_dtype)
    out = pl.pallas_call(
        kernel,
        out_shape=jax.ShapeDtypeStruct((B, out_dim), jnp.float32),
        grid=(grid,),
        in_specs=in_specs,
        out_specs=out_spec,
        compiler_params=pltpu.CompilerParams(
            dimension_semantics=("parallel",)),
        cost_estimate=pl.CostEstimate(
            flops=int(flops),
            transcendentals=int(transcendentals),
            bytes_accessed=int(bytes_accessed)),
    )(s, z, prepared["w1s"], prepared["w1z"], prepared["b1"],
      prepared["w2"], prepared["b2"], prepared["w3"], prepared["b3"],
      prepared["w4"], prepared["b4"])
    return out


def decoder_forward_ref_mirror(z, s, prepared, max_action, mish_dtype):
    """Pure-JAX mirror of the kernel math (bf16 weights, f32 MXU accumulate,
    Mish in `mish_dtype`, exact divide instead of approx reciprocal)."""
    def dot(a, w):
        return jnp.dot(a.astype(jnp.bfloat16), w,
                       preferred_element_type=jnp.float32)

    def mish(v):
        return _mish(v.astype(mish_dtype), approx_recip=False)

    h = mish(dot(s, prepared["w1s"]) + dot(z, prepared["w1z"])
             + prepared["b1"]).astype(jnp.bfloat16)
    h = mish(dot(h, prepared["w2"]) + prepared["b2"]).astype(jnp.bfloat16)
    h = mish(dot(h, prepared["w3"]) + prepared["b3"]).astype(jnp.bfloat16)
    a = dot(h, prepared["w4"]) + prepared["b4"]
    return jnp.clip(a, -max_action, max_action)


def decoder_forward_ref_f32(z, s, params, max_action):
    """Full-f32 pure-JAX reference matching the PyTorch module."""
    x = jnp.concatenate([s, z], axis=1).astype(jnp.float32)

    def mish(v):
        return v * jnp.tanh(jax.nn.softplus(v))

    h = mish(x @ params["w1"] + params["b1"])
    h = mish(h @ params["w2"] + params["b2"])
    h = mish(h @ params["w3"] + params["b3"])
    a = h @ params["w4"] + params["b4"]
    return jnp.clip(a, -max_action, max_action)


if __name__ == "__main__":
    state_dim = 11
    action_dim = 3
    max_action = 1.0

    key = jax.random.PRNGKey(0)
    k_params = jax.random.fold_in(key, 123)
    params = init_decoder_params(k_params, state_dim, action_dim)
    prepared = prepare_decoder_params(params, state_dim)
    mish_dtype = _mish_compute_dtype()

    # batch=4: tiny-batch path; batch=37: ragged (not a multiple of the tile).
    for batch in (4, 37):
        ks, kz = jax.random.split(jax.random.fold_in(key, batch))
        s = jax.random.normal(ks, (batch, state_dim), jnp.float32)
        z = jax.random.normal(kz, (batch, action_dim), jnp.float32)

        out = jax.block_until_ready(decoder_forward(z, s, prepared, max_action))
        assert out.shape == (batch, action_dim)
        assert bool(jnp.all(jnp.isfinite(out)))

        # Tight-ish check against a pure-JAX mirror of the kernel math.
        ref_mirror = decoder_forward_ref_mirror(z, s, prepared, max_action,
                                                mish_dtype)
        assert jnp.allclose(out, ref_mirror, atol=2e-2, rtol=2e-2), (
            batch, out, ref_mirror)

        # Semantics check against the full-f32 PyTorch-equivalent reference
        # (loose tolerance accounts for bf16 weights / bf16 Mish on v6e/v7x).
        ref_f32 = decoder_forward_ref_f32(z, s, params, max_action)
        assert jnp.allclose(out, ref_f32, atol=5e-2, rtol=5e-2), (
            batch, out, ref_f32)

    print("KERNEL_OK")
</pallas_src>

<mosaic_0001>
module attributes {stable_mosaic.version = 11 : i64} {
  func.func @decoder_kernel(%arg0: i32, %arg1: memref<16x11xf32, #tpu.memory_space<vmem>>, %arg2: memref<16x3xf32, #tpu.memory_space<vmem>>, %arg3: memref<11x256xbf16, #tpu.memory_space<vmem>>, %arg4: memref<3x256xbf16, #tpu.memory_space<vmem>>, %arg5: memref<1x256xf32, #tpu.memory_space<vmem>>, %arg6: memref<256x256xbf16, #tpu.memory_space<vmem>>, %arg7: memref<1x256xf32, #tpu.memory_space<vmem>>, %arg8: memref<256x256xbf16, #tpu.memory_space<vmem>>, %arg9: memref<1x256xf32, #tpu.memory_space<vmem>>, %arg10: memref<256x3xbf16, #tpu.memory_space<vmem>>, %arg11: memref<1x3xf32, #tpu.memory_space<vmem>>, %arg12: memref<16x3xf32, #tpu.memory_space<vmem>>) attributes {dimension_semantics = [#tpu.dimension_semantics<parallel>], iteration_bounds = array<i64: 1>, scalar_prefetch = 0 : i64, scratch_operands = 0 : i64, tpu.core_type = #tpu.core_type<tc>, window_params = [{transform_indices = @transform_0, window_bounds = array<i64: 16, 11>}, {transform_indices = @transform_1, window_bounds = array<i64: 16, 3>}, {pipeline_mode = #tpu.pipeline_mode<synchronous>, transform_indices = @transform_2, window_bounds = array<i64: 11, 256>}, {pipeline_mode = #tpu.pipeline_mode<synchronous>, transform_indices = @transform_3, window_bounds = array<i64: 3, 256>}, {pipeline_mode = #tpu.pipeline_mode<synchronous>, transform_indices = @transform_4, window_bounds = array<i64: 1, 256>}, {pipeline_mode = #tpu.pipeline_mode<synchronous>, transform_indices = @transform_5, window_bounds = array<i64: 256, 256>}, {pipeline_mode = #tpu.pipeline_mode<synchronous>, transform_indices = @transform_6, window_bounds = array<i64: 1, 256>}, {pipeline_mode = #tpu.pipeline_mode<synchronous>, transform_indices = @transform_7, window_bounds = array<i64: 256, 256>}, {pipeline_mode = #tpu.pipeline_mode<synchronous>, transform_indices = @transform_8, window_bounds = array<i64: 1, 256>}, {pipeline_mode = #tpu.pipeline_mode<synchronous>, transform_indices = @transform_9, window_bounds = array<i64: 256, 3>}, {pipeline_mode = #tpu.pipeline_mode<synchronous>, transform_indices = @transform_10, window_bounds = array<i64: 1, 3>}, {transform_indices = @transform_11, window_bounds = array<i64: 16, 3>}]} {
    %c0 = arith.constant 0 : index
    %c0_0 = arith.constant 0 : index
    %0 = vector.load %arg1[%c0, %c0_0] : memref<16x11xf32, #tpu.memory_space<vmem>>, vector<16x11xf32>
    %1 = arith.truncf %0 : vector<16x11xf32> to vector<16x11xbf16>
    %c0_1 = arith.constant 0 : index
    %c0_2 = arith.constant 0 : index
    %2 = vector.load %arg2[%c0_1, %c0_2] : memref<16x3xf32, #tpu.memory_space<vmem>>, vector<16x3xf32>
    %3 = arith.truncf %2 : vector<16x3xf32> to vector<16x3xbf16>
    %c0_3 = arith.constant 0 : index
    %c0_4 = arith.constant 0 : index
    %4 = vector.load %arg3[%c0_3, %c0_4] : memref<11x256xbf16, #tpu.memory_space<vmem>>, vector<11x256xbf16>
    %cst = arith.constant dense<0.000000e+00> : vector<16x256xf32>
    %5 = tpu.matmul %1, %4, %cst {dimension_numbers = #tpu.dot_dimension_numbers<[1], [0], [0], [1], [0, 0, 1, 1], [], []>} : vector<16x11xbf16>, vector<11x256xbf16>, vector<16x256xf32> -> vector<16x256xf32>
    %c0_5 = arith.constant 0 : index
    %c0_6 = arith.constant 0 : index
    %6 = vector.load %arg4[%c0_5, %c0_6] : memref<3x256xbf16, #tpu.memory_space<vmem>>, vector<3x256xbf16>
    %cst_7 = arith.constant dense<0.000000e+00> : vector<16x256xf32>
    %7 = tpu.matmul %3, %6, %cst_7 {dimension_numbers = #tpu.dot_dimension_numbers<[1], [0], [0], [1], [0, 0, 1, 1], [], []>} : vector<16x3xbf16>, vector<3x256xbf16>, vector<16x256xf32> -> vector<16x256xf32>
    %8 = arith.addf %5, %7 : vector<16x256xf32>
    %c0_8 = arith.constant 0 : index
    %c0_9 = arith.constant 0 : index
    %9 = vector.load %arg5[%c0_8, %c0_9] : memref<1x256xf32, #tpu.memory_space<vmem>>, vector<1x256xf32>
    %10 = vector.broadcast %9 : vector<1x256xf32> to vector<16x256xf32>
    %11 = arith.addf %8, %10 : vector<16x256xf32>
    %cst_10 = arith.constant 2.000000e+01 : f32
    %12 = vector.broadcast %cst_10 : f32 to vector<16x256xf32>
    %13 = arith.minimumf %11, %12 : vector<16x256xf32>
    %14 = math.exp %13 : vector<16x256xf32>
    %cst_11 = arith.constant 2.000000e+00 : f32
    %15 = vector.broadcast %cst_11 : f32 to vector<16x256xf32>
    %16 = arith.addf %14, %15 : vector<16x256xf32>
    %17 = arith.mulf %14, %16 : vector<16x256xf32>
    %18 = arith.mulf %11, %17 : vector<16x256xf32>
    %cst_12 = arith.constant 2.000000e+00 : f32
    %19 = vector.broadcast %cst_12 : f32 to vector<16x256xf32>
    %20 = arith.addf %17, %19 : vector<16x256xf32>
    %21 = tpu.reciprocal %20 {approx = true} : vector<16x256xf32> -> vector<16x256xf32>
    %22 = arith.mulf %18, %21 : vector<16x256xf32>
    %23 = arith.truncf %22 : vector<16x256xf32> to vector<16x256xbf16>
    %c0_13 = arith.constant 0 : index
    %c0_14 = arith.constant 0 : index
    %24 = vector.load %arg6[%c0_13, %c0_14] : memref<256x256xbf16, #tpu.memory_space<vmem>>, vector<256x256xbf16>
    %cst_15 = arith.constant dense<0.000000e+00> : vector<16x256xf32>
    %25 = tpu.matmul %23, %24, %cst_15 {dimension_numbers = #tpu.dot_dimension_numbers<[1], [0], [0], [1], [0, 0, 1, 1], [], []>} : vector<16x256xbf16>, vector<256x256xbf16>, vector<16x256xf32> -> vector<16x256xf32>
    %c0_16 = arith.constant 0 : index
    %c0_17 = arith.constant 0 : index
    %26 = vector.load %arg7[%c0_16, %c0_17] : memref<1x256xf32, #tpu.memory_space<vmem>>, vector<1x256xf32>
    %27 = vector.broadcast %26 : vector<1x256xf32> to vector<16x256xf32>
    %28 = arith.addf %25, %27 : vector<16x256xf32>
    %cst_18 = arith.constant 2.000000e+01 : f32
    %29 = vector.broadcast %cst_18 : f32 to vector<16x256xf32>
    %30 = arith.minimumf %28, %29 : vector<16x256xf32>
    %31 = math.exp %30 : vector<16x256xf32>
    %cst_19 = arith.constant 2.000000e+00 : f32
    %32 = vector.broadcast %cst_19 : f32 to vector<16x256xf32>
    %33 = arith.addf %31, %32 : vector<16x256xf32>
    %34 = arith.mulf %31, %33 : vector<16x256xf32>
    %35 = arith.mulf %28, %34 : vector<16x256xf32>
    %cst_20 = arith.constant 2.000000e+00 : f32
    %36 = vector.broadcast %cst_20 : f32 to vector<16x256xf32>
    %37 = arith.addf %34, %36 : vector<16x256xf32>
    %38 = tpu.reciprocal %37 {approx = true} : vector<16x256xf32> -> vector<16x256xf32>
    %39 = arith.mulf %35, %38 : vector<16x256xf32>
    %40 = arith.truncf %39 : vector<16x256xf32> to vector<16x256xbf16>
    %c0_21 = arith.constant 0 : index
    %c0_22 = arith.constant 0 : index
    %41 = vector.load %arg8[%c0_21, %c0_22] : memref<256x256xbf16, #tpu.memory_space<vmem>>, vector<256x256xbf16>
    %cst_23 = arith.constant dense<0.000000e+00> : vector<16x256xf32>
    %42 = tpu.matmul %40, %41, %cst_23 {dimension_numbers = #tpu.dot_dimension_numbers<[1], [0], [0], [1], [0, 0, 1, 1], [], []>} : vector<16x256xbf16>, vector<256x256xbf16>, vector<16x256xf32> -> vector<16x256xf32>
    %c0_24 = arith.constant 0 : index
    %c0_25 = arith.constant 0 : index
    %43 = vector.load %arg9[%c0_24, %c0_25] : memref<1x256xf32, #tpu.memory_space<vmem>>, vector<1x256xf32>
    %44 = vector.broadcast %43 : vector<1x256xf32> to vector<16x256xf32>
    %45 = arith.addf %42, %44 : vector<16x256xf32>
    %cst_26 = arith.constant 2.000000e+01 : f32
    %46 = vector.broadcast %cst_26 : f32 to vector<16x256xf32>
    %47 = arith.minimumf %45, %46 : vector<16x256xf32>
    %48 = math.exp %47 : vector<16x256xf32>
    %cst_27 = arith.constant 2.000000e+00 : f32
    %49 = vector.broadcast %cst_27 : f32 to vector<16x256xf32>
    %50 = arith.addf %48, %49 : vector<16x256xf32>
    %51 = arith.mulf %48, %50 : vector<16x256xf32>
    %52 = arith.mulf %45, %51 : vector<16x256xf32>
    %cst_28 = arith.constant 2.000000e+00 : f32
    %53 = vector.broadcast %cst_28 : f32 to vector<16x256xf32>
    %54 = arith.addf %51, %53 : vector<16x256xf32>
    %55 = tpu.reciprocal %54 {approx = true} : vector<16x256xf32> -> vector<16x256xf32>
    %56 = arith.mulf %52, %55 : vector<16x256xf32>
    %57 = arith.truncf %56 : vector<16x256xf32> to vector<16x256xbf16>
    %c0_29 = arith.constant 0 : index
    %c0_30 = arith.constant 0 : index
    %58 = vector.load %arg10[%c0_29, %c0_30] : memref<256x3xbf16, #tpu.memory_space<vmem>>, vector<256x3xbf16>
    %cst_31 = arith.constant dense<0.000000e+00> : vector<16x3xf32>
    %59 = tpu.matmul %57, %58, %cst_31 {dimension_numbers = #tpu.dot_dimension_numbers<[1], [0], [0], [1], [0, 0, 1, 1], [], []>} : vector<16x256xbf16>, vector<256x3xbf16>, vector<16x3xf32> -> vector<16x3xf32>
    %c0_32 = arith.constant 0 : index
    %c0_33 = arith.constant 0 : index
    %60 = vector.load %arg11[%c0_32, %c0_33] : memref<1x3xf32, #tpu.memory_space<vmem>>, vector<1x3xf32>
    %61 = vector.broadcast %60 : vector<1x3xf32> to vector<16x3xf32>
    %62 = arith.addf %59, %61 : vector<16x3xf32>
    %cst_34 = arith.constant -1.000000e+00 : f32
    %cst_35 = arith.constant 1.000000e+00 : f32
    %63 = vector.broadcast %cst_34 : f32 to vector<16x3xf32>
    %64 = arith.maximumf %63, %62 : vector<16x3xf32>
    %65 = vector.broadcast %cst_35 : f32 to vector<16x3xf32>
    %66 = arith.minimumf %65, %64 : vector<16x3xf32>
    %c0_36 = arith.constant 0 : index
    %c0_37 = arith.constant 0 : index
    %67 = vector.load %arg12[%c0_36, %c0_37] : memref<16x3xf32, #tpu.memory_space<vmem>>, vector<16x3xf32>
    tpu.vector_store %arg12[%c0_36, %c0_37], %66 {strides = array<i32>} : memref<16x3xf32, #tpu.memory_space<vmem>>, vector<16x3xf32>,
    return
  }
  func.func @transform_0(%arg0: i32) -> (i32, i32) {
    %c0_i32 = arith.constant 0 : i32
    %c0_i32_0 = arith.constant 0 : i32
    return %arg0, %c0_i32 : i32, i32
  }
  func.func @transform_1(%arg0: i32) -> (i32, i32) {
    %c0_i32 = arith.constant 0 : i32
    %c0_i32_0 = arith.constant 0 : i32
    return %arg0, %c0_i32 : i32, i32
  }
  func.func @transform_2(%arg0: i32) -> (i32, i32) {
    %c0_i32 = arith.constant 0 : i32
    %c0_i32_0 = arith.constant 0 : i32
    %c0_i32_1 = arith.constant 0 : i32
    return %c0_i32, %c0_i32_0 : i32, i32
  }
  func.func @transform_3(%arg0: i32) -> (i32, i32) {
    %c0_i32 = arith.constant 0 : i32
    %c0_i32_0 = arith.constant 0 : i32
    %c0_i32_1 = arith.constant 0 : i32
    return %c0_i32, %c0_i32_0 : i32, i32
  }
  func.func @transform_4(%arg0: i32) -> (i32, i32) {
    %c0_i32 = arith.constant 0 : i32
    %c0_i32_0 = arith.constant 0 : i32
    %c0_i32_1 = arith.constant 0 : i32
    return %c0_i32, %c0_i32_0 : i32, i32
  }
  func.func @transform_5(%arg0: i32) -> (i32, i32) {
    %c0_i32 = arith.constant 0 : i32
    %c0_i32_0 = arith.constant 0 : i32
    %c0_i32_1 = arith.constant 0 : i32
    return %c0_i32, %c0_i32_0 : i32, i32
  }
  func.func @transform_6(%arg0: i32) -> (i32, i32) {
    %c0_i32 = arith.constant 0 : i32
    %c0_i32_0 = arith.constant 0 : i32
    %c0_i32_1 = arith.constant 0 : i32
    return %c0_i32, %c0_i32_0 : i32, i32
  }
  func.func @transform_7(%arg0: i32) -> (i32, i32) {
    %c0_i32 = arith.constant 0 : i32
    %c0_i32_0 = arith.constant 0 : i32
    %c0_i32_1 = arith.constant 0 : i32
    return %c0_i32, %c0_i32_0 : i32, i32
  }
  func.func @transform_8(%arg0: i32) -> (i32, i32) {
    %c0_i32 = arith.constant 0 : i32
    %c0_i32_0 = arith.constant 0 : i32
    %c0_i32_1 = arith.constant 0 : i32
    return %c0_i32, %c0_i32_0 : i32, i32
  }
  func.func @transform_9(%arg0: i32) -> (i32, i32) {
    %c0_i32 = arith.constant 0 : i32
    %c0_i32_0 = arith.constant 0 : i32
    %c0_i32_1 = arith.constant 0 : i32
    return %c0_i32, %c0_i32_0 : i32, i32
  }
  func.func @transform_10(%arg0: i32) -> (i32, i32) {
    %c0_i32 = arith.constant 0 : i32
    %c0_i32_0 = arith.constant 0 : i32
    %c0_i32_1 = arith.constant 0 : i32
    return %c0_i32, %c0_i32_0 : i32, i32
  }
  func.func @transform_11(%arg0: i32) -> (i32, i32) {
    %c0_i32 = arith.constant 0 : i32
    %c0_i32_0 = arith.constant 0 : i32
    return %arg0, %c0_i32 : i32, i32
  }
}

</mosaic_0001>

<bundles_post_ra>
// kernel: tpu_custom_call.1
= control target key start
LH: loop header
LB: loop body
LE: loop exit
PB: predicated region body
PF: predicated region fallthrough
CT: control target
= control target key end

     0   :  { %16 = vsyncpa [#allocation3], 0  ;;  %s1589_s0 = inlined_call_operand.vmem [shape: f32[4,11], index: 0, kind: input, shape index: {}]   ;;  %s1590_s1 = inlined_call_operand.vmem [shape: f32[4,3], index: 1, kind: input, shape index: {}]   ;;  %s1591_s2 = inlined_call_operand.vmem [shape: bf16[11,256], index: 2, kind: input, shape index: {}]   ;;  %s1592_s3 = inlined_call_operand.vmem [shape: bf16[3,256], index: 3, kind: input, shape index: {}]   ;;  %s1593_s4 = inlined_call_operand.vmem [shape: f32[1,256], index: 4, kind: input, shape index: {}]   ;;  %s1594_s5 = inlined_call_operand.hbm [shape: bf16[256,256], index: 5, kind: input, shape index: {}]   ;;  %s1595_s6 = inlined_call_operand.vmem [shape: f32[1,256], index: 6, kind: input, shape index: {}]   ;;  %s1596_s7 = inlined_call_operand.hbm [shape: bf16[256,256], index: 7, kind: input, shape index: {}]   ;;  %s1597_s8 = inlined_call_operand.vmem [shape: f32[1,256], index: 8, kind: input, shape index: {}]   ;;  %s1598_s9 = inlined_call_operand.vmem [shape: bf16[256,3], index: 9, kind: input, shape index: {}]   ;;  %s1599_s10 = inlined_call_operand.vmem [shape: f32[1,3], index: 10, kind: input, shape index: {}]   ;;  %s1600_s11 = inlined_call_operand.hbm [shape: f32[4,3], index: 11, kind: output, shape index: {}]  }
   0x1   :  { %17 = vsyncpa [#allocation6], 0 }
   0x2   :  { %18 = vsyncpa [#allocation4], 0  ;;  %s1390_s17 = smov [#allocation2]   ;;  %s1318_s21 = scalar_lea.hbm %s1594_s5, 4096 }
   0x3   :  { %s34_s18 = sshll.u32 %s1390_s17, 4  ;;  %p1319_p0 = scmp.ne.s32.totalorder %s1594_s5, %s1318_s21  ;;  %s35_s18 = int_to_ptr.vmem [resolvable:$true] %s34_s18 }
   0x4   :  { %p1322_p1 = scmp.lt.u32.totalorder %s1318_s21, %s1594_s5 }
   0x6   :  { %p1324_p2 = pnand %p1322_p1, %p1319_p0 }
   0x8   :  { %1327 = shalt.err (!%p1324_p2)
}
   0x9   :  { %s1328_s26 = scalar_lea.vmem %s35_s18, 4096  ;;  %p1333_p4 = scmp.lt.s32.totalorder %s35_s18, %s35_s18 }
   0xa   :  { %p1329_p3 = scmp.ne.s32.totalorder %s35_s18, %s1328_s26  ;;  %p1334_p5 = scmp.lt.s32.totalorder %s1328_s26, %s1328_s26 }
   0xc   :  { %p1335_p6 = por %p1334_p5, %p1333_p4 }
   0xe   :  { %p1336_p7 = pnand %p1335_p6, %p1329_p3 }
  0x10   :  { %1339 = shalt.err (!%p1336_p7)
}
  0x11   :  { %s1391_s27 = smov 128   ;;  %s1392_s28 = smov 8  }
  0x12   :  { %40 = dma.hbm_to_vmem [thread:$0]  %s1594_s5, 4096, %s35_s18, [#allocation3], %s1391_s27, %s1391_s27, %s1392_s28  }
  0x13   :  { %s1393_s12 = smov [#allocation5]   ;;  %s1340_s16 = scalar_lea.hbm %s1596_s7, 4096 }
  0x14   :  { %s48_s13 = sshll.u32 %s1393_s12, 4  ;;  %p1341_p8 = scmp.ne.s32.totalorder %s1596_s7, %s1340_s16  ;;  %s49_s13 = int_to_ptr.vmem [resolvable:$true] %s48_s13 }
  0x15   :  { %p1344_p9 = scmp.lt.u32.totalorder %s1340_s16, %s1596_s7 }
  0x17   :  { %p1346_p10 = pnand %p1344_p9, %p1341_p8 }
  0x19   :  { %1349 = shalt.err (!%p1346_p10)
}
  0x1a   :  { %s1350_s22 = scalar_lea.vmem %s49_s13, 4096  ;;  %p1355_p12 = scmp.lt.s32.totalorder %s49_s13, %s49_s13 }
  0x1b   :  { %p1351_p11 = scmp.ne.s32.totalorder %s49_s13, %s1350_s22  ;;  %p1356_p13 = scmp.lt.s32.totalorder %s1350_s22, %s1350_s22 }
  0x1d   :  { %p1357_p0 = por %p1356_p13, %p1355_p12 }
  0x1f   :  { %p1358_p1 = pnand %p1357_p0, %p1351_p11 }
  0x21   :  { %1361 = shalt.err (!%p1358_p1)
}
  0x22   :  { %54 = dma.hbm_to_vmem [thread:$0]  %s1596_s7, 4096, %s49_s13, [#allocation6], %s1391_s27, %s1391_s27, %s1392_s28  }
  0x23   :  { %1384 = dma.done.wait [#allocation3], 4096  }
  0x24   :  { %1385 = vsyncadd [#allocation3], 4294963200 }
  0x25   :  { %1386 = dma.done.wait [#allocation6], 4096  }
  0x26   :  { %1387 = vsyncadd [#allocation6], 4294963200  ;;  %vm90_vm0 = vcmask 1040384   ;;  %vm155_vm1 = vcmask 1044480   ;;  %v1394_v0 = vmov 0   ;;  %vm91_vm2 = vcmask 1041408  }
  0x27   :  { %132 = vmatprep.mubr.bf16.mxu0 %v1394_v0  ;;  %v1395_v1 = vmov 65535   ;;  %vm156_vm3 = vcmask 1045504   ;;  %v1032_v5 = vld.sshfl [vmem:[%s1592_s3] sm:$0x33 pattern:$0x76325410] }
  0x28   :  { %v92_v2 = vsel %vm90_vm0, 4294967295, %v1395_v1  ;;  %v157_v3 = vsel %vm155_vm1, 4294967295, %v1395_v1  ;;  %v71_v6 = vld [vmem:[%s1590_s1] sm:$0xff]  ;;  %v85_v7 = vcombine.high %v1032_v5, %v1032_v5  ;;  %v72_v8 = vld [vmem:[%s1590_s1 + $0x8] sm:$0xff]  ;;  %v1161_v18 = vld [vmem:[#allocation2 + $0x14] ss:$8 sps:$4 sm:$0xff]  }
  0x29   :  { %v93_v4 = vsel %vm91_vm2, %v92_v2, 0  ;;  %v158_v9 = vsel %vm156_vm3, %v157_v3, 0  ;;  %v1155_v11 = vld [vmem:[%s1591_s2] ss:$8 sps:$4 sm:$0x3f]   ;;  %v73_v17 = vpack.c.bf16 %v72_v8, %v71_v6  ;;  %vm86_vm4 = vcmask 23552  }
  0x2a   :  { %v95_v10 = vand.u32 %v1032_v5, %v93_v4  ;;  %v1157_v12 = vld [vmem:[%s1591_s2 + $0x4] ss:$8 sps:$4 sm:$0x3f]   ;;  %v98_v13 = vand.u32 %v93_v4, %v85_v7  ;;  %v1160_v16 = vld [vmem:[#allocation2] ss:$8 sps:$4 sm:$0xff]   ;;  %v160_v19 = vand.u32 %v1155_v11, %v158_v9  ;;  %vm151_vm5 = vcmask 89088  }
  0x2b   :  { %v1158_v14 = vld [vmem:[#allocation2 + $0x4] ss:$8 sps:$4 sm:$0xff]   ;;  %v163_v15 = vand.u32 %v1157_v12, %v158_v9  ;;  %v1163_v20 = vld [vmem:[#allocation2 + $0x10] ss:$8 sps:$4 sm:$0xff]   ;;  %v1166_v22 = vld [vmem:[#allocation2 + $0x20] ss:$8 sps:$4 sm:$0xff]  }
  0x2c   :  { %100 = vmatprep.subr.bf16.mxu0 %v98_v13  ;;  %466 = vmatprep.subr.bf16.mxu1 %v1158_v14  ;;  %v1164_v21 = vld [vmem:[#allocation2 + $0x24] ss:$8 sps:$4 sm:$0xff]   ;;  %v1167_v23 = vld [vmem:[#allocation2 + $0x34] ss:$8 sps:$4 sm:$0xff]   ;;  %v1169_v26 = vld [vmem:[#allocation2 + $0x30] ss:$8 sps:$4 sm:$0xff]  }
  0x2d   :  { %101 = vmatpush1.bf16.msra.mxu0 %v95_v10  ;;  %467 = vmatpush1.bf16.msra.mxu1 %v1160_v16  ;;  %v68_v24 = vld [vmem:[%s1589_s0] sm:$0xff]  ;;  %v69_v25 = vld [vmem:[%s1589_s0 + $0x8] sm:$0xff]  ;;  %v1173_v30 = vld [vmem:[#allocation2 + $0x54] ss:$8 sps:$4 sm:$0xff]  }
  0x2e   :  { %165 = vmatprep.subr.bf16.mxu0 %v163_v15  ;;  %468 = vmatprep.subr.bf16.mxu1 %v1161_v18  ;;  %v1170_v27 = vld [vmem:[#allocation2 + $0x44] ss:$8 sps:$4 sm:$0xff]   ;;  %v70_v28 = vpack.c.bf16 %v69_v25, %v68_v24  ;;  %v1172_v29 = vld [vmem:[#allocation2 + $0x40] ss:$8 sps:$4 sm:$0xff]   ;;  %v1175_v31 = vld [vmem:[#allocation2 + $0x50] ss:$8 sps:$4 sm:$0xff]  }
  0x2f   :  { %v1176_v32 = vld [vmem:[#allocation2 + $0x64] ss:$8 sps:$4 sm:$0xff]   ;;  %v1178_v33 = vld [vmem:[#allocation2 + $0x60] ss:$8 sps:$4 sm:$0xff]   ;;  %v1179_v34 = vld [vmem:[#allocation2 + $0x74] ss:$8 sps:$4 sm:$0xff]  }
  0x30   :  { %1033 = vmatmul.mubr.msk.bf16.vlgmr.msra.gmra.mrb[0].mxu0 %vm86_vm4, %v73_v17  ;;  %v1181_v35 = vld [vmem:[#allocation2 + $0x70] ss:$8 sps:$4 sm:$0xff]   ;;  %v1182_v36 = vld [vmem:[#allocation2 + $0x84] ss:$8 sps:$4 sm:$0xff]   ;;  %v1184_v37 = vld [vmem:[#allocation2 + $0x80] ss:$8 sps:$4 sm:$0xff]  }
  0x31   :  { %166 = vmatpush1.bf16.msra.mxu0 %v160_v19  ;;  %197 = vmatprep.mubr.bf16.mxu0 %v1394_v0  ;;  %v1185_v38 = vld [vmem:[#allocation2 + $0x94] ss:$8 sps:$4 sm:$0xff]   ;;  %v1187_v39 = vld [vmem:[#allocation2 + $0x90] ss:$8 sps:$4 sm:$0xff]   ;;  %v1188_v40 = vld [vmem:[#allocation2 + $0xa4] ss:$8 sps:$4 sm:$0xff]   ;;  %v210_v0 = vlaneseq }
  0x32   :  { %469 = vmatpush1.bf16.msra.mxu1 %v1163_v20  ;;  %v1190_v41 = vld [vmem:[#allocation2 + $0xa0] ss:$8 sps:$4 sm:$0xff]   ;;  %v1191_v42 = vld [vmem:[#allocation2 + $0xb4] ss:$8 sps:$4 sm:$0xff]   ;;  %v1193_v43 = vld [vmem:[#allocation2 + $0xb0] ss:$8 sps:$4 sm:$0xff]  }
  0x33   :  { %470 = vmatprep.subr.bf16.mxu1 %v1164_v21  ;;  %v1194_v44 = vld [vmem:[#allocation2 + $0xc4] ss:$8 sps:$4 sm:$0xff]   ;;  %v1196_v45 = vld [vmem:[#allocation2 + $0xc0] ss:$8 sps:$4 sm:$0xff]   ;;  %v1197_v46 = vld [vmem:[#allocation2 + $0xd4] ss:$8 sps:$4 sm:$0xff]  }
  0x34   :  { %v1199_v47 = vld [vmem:[#allocation2 + $0xd0] ss:$8 sps:$4 sm:$0xff]   ;;  %v1200_v48 = vld [vmem:[#allocation2 + $0xe4] ss:$8 sps:$4 sm:$0xff]   ;;  %v1202_v49 = vld [vmem:[#allocation2 + $0xe0] ss:$8 sps:$4 sm:$0xff]  }
  0x35   :  { %v1203_v50 = vld [vmem:[#allocation2 + $0xf4] ss:$8 sps:$4 sm:$0xff]   ;;  %v1205_v51 = vld [vmem:[#allocation2 + $0xf0] ss:$8 sps:$4 sm:$0xff]   ;;  %v1206_v52 = vld [vmem:[#allocation5] ss:$8 sps:$4 sm:$0xff]  }
  0x36   :  { %471 = vmatpush1.bf16.msra.mxu1 %v1166_v22  ;;  %v1208_v53 = vld [vmem:[#allocation5 + $0x4] ss:$8 sps:$4 sm:$0xff]   ;;  %v1211_v54 = vld [vmem:[#allocation5 + $0x14] ss:$8 sps:$4 sm:$0xff]   ;;  %v1209_v55 = vld [vmem:[#allocation5 + $0x10] ss:$8 sps:$4 sm:$0xff]  }
  0x37   :  { %472 = vmatprep.subr.bf16.mxu1 %v1167_v23  ;;  %751 = vmatprep.subr.bf16.mxu0 %v1208_v53  ;;  %v1214_v56 = vld [vmem:[#allocation5 + $0x24] ss:$8 sps:$4 sm:$0xff]   ;;  %v1212_v57 = vld [vmem:[#allocation5 + $0x20] ss:$8 sps:$4 sm:$0xff]   ;;  %v1217_v58 = vld [vmem:[#allocation5 + $0x34] ss:$8 sps:$4 sm:$0xff]  }
  0x38   :  { %v1215_v59 = vld [vmem:[#allocation5 + $0x30] ss:$8 sps:$4 sm:$0xff]   ;;  %v1220_v60 = vld [vmem:[#allocation5 + $0x44] ss:$8 sps:$4 sm:$0xff]   ;;  %v1218_v61 = vld [vmem:[#allocation5 + $0x40] ss:$8 sps:$4 sm:$0xff]  }
  0x39   :  { %v1223_v62 = vld [vmem:[#allocation5 + $0x54] ss:$8 sps:$4 sm:$0xff]   ;;  %v1221_v63 = vld [vmem:[#allocation5 + $0x50] ss:$8 sps:$4 sm:$0xff]   ;;  %v211_v1 = vshrl.u32 %v210_v0, 7 }
  0x3a   :  { %473 = vmatpush1.bf16.msra.mxu1 %v1169_v26  ;;  %v208_v3 = vld [vmem:[%s1593_s4] sm:$0x3]  ;;  %v1226_v53 = vld [vmem:[#allocation5 + $0x64] ss:$8 sps:$4 sm:$0xff]   ;;  %v1239_v0 = vld [vmem:[#allocation5 + $0xb0] ss:$8 sps:$4 sm:$0xff]  }
  0x3b   :  { %474 = vmatprep.subr.bf16.mxu1 %v1170_v27  ;;  %v1505_v2 = vsub.s32 0, %v211_v1  ;;  %v1510_v4 = vsub.s32 1, %v211_v1  ;;  %v1244_v1 = vld [vmem:[#allocation5 + $0xc4] ss:$8 sps:$4 sm:$0xff]  }
  0x3c   :  { %1036 = vmatmul.mubr.msk.bf16.vlgmr.msra.gmra.mrb[0].mxu0 %vm151_vm5, %v70_v28 }
  0x3d   :  { %752 = vmatpush1.bf16.msra.mxu0 %v1206_v52  ;;  %v213_v5 = vrot.slane %v208_v3, %v1505_v2  ;;  %v217_v6 = vrot.slane %v208_v3, %v1510_v4  ;;  %v1242_v3 = vld [vmem:[#allocation5 + $0xc0] ss:$8 sps:$4 sm:$0xff]  }
  0x3e   :  { %475 = vmatpush1.bf16.msra.mxu1 %v1172_v29  ;;  %753 = vmatprep.subr.bf16.mxu0 %v1211_v54  ;;  %v1224_v54 = vld [vmem:[#allocation5 + $0x60] ss:$8 sps:$4 sm:$0xff]  }
  0x3f   :  { %476 = vmatprep.subr.bf16.mxu1 %v1173_v30 }
  0x41   :  { %754 = vmatpush1.bf16.msra.mxu0 %v1209_v55  ;;  %v1229_v55 = vld [vmem:[#allocation5 + $0x74] ss:$8 sps:$4 sm:$0xff]  }
  0x42   :  { %477 = vmatpush1.bf16.msra.mxu1 %v1175_v31  ;;  %755 = vmatprep.subr.bf16.mxu0 %v1214_v56  ;;  %v1227_v56 = vld [vmem:[#allocation5 + $0x70] ss:$8 sps:$4 sm:$0xff]  }
  0x43   :  { %478 = vmatprep.subr.bf16.mxu1 %v1176_v32 }
  0x45   :  { %756 = vmatpush1.bf16.msra.mxu0 %v1212_v57  ;;  %v1232_v57 = vld [vmem:[#allocation5 + $0x84] ss:$8 sps:$4 sm:$0xff]  }
  0x46   :  { %479 = vmatpush1.bf16.msra.mxu1 %v1178_v33  ;;  %757 = vmatprep.subr.bf16.mxu0 %v1217_v58  ;;  %v1230_v58 = vld [vmem:[#allocation5 + $0x80] ss:$8 sps:$4 sm:$0xff]  }
  0x47   :  { %480 = vmatprep.subr.bf16.mxu1 %v1179_v34 }
  0x49   :  { %758 = vmatpush1.bf16.msra.mxu0 %v1215_v59  ;;  %v1235_v59 = vld [vmem:[#allocation5 + $0x94] ss:$8 sps:$4 sm:$0xff]  }
  0x4a   :  { %481 = vmatpush1.bf16.msra.mxu1 %v1181_v35  ;;  %759 = vmatprep.subr.bf16.mxu0 %v1220_v60  ;;  %v1233_v60 = vld [vmem:[#allocation5 + $0x90] ss:$8 sps:$4 sm:$0xff]  }
  0x4b   :  { %482 = vmatprep.subr.bf16.mxu1 %v1182_v36 }
  0x4d   :  { %760 = vmatpush1.bf16.msra.mxu0 %v1218_v61  ;;  %v1238_v61 = vld [vmem:[#allocation5 + $0xa4] ss:$8 sps:$4 sm:$0xff]  }
  0x4e   :  { %483 = vmatpush1.bf16.msra.mxu1 %v1184_v37  ;;  %761 = vmatprep.subr.bf16.mxu0 %v1223_v62  ;;  %v1236_v62 = vld [vmem:[#allocation5 + $0xa0] ss:$8 sps:$4 sm:$0xff]  }
  0x4f   :  { %484 = vmatprep.subr.bf16.mxu1 %v1185_v38 }
  0x51   :  { %762 = vmatpush1.bf16.msra.mxu0 %v1221_v63  ;;  %v1241_v63 = vld [vmem:[#allocation5 + $0xb4] ss:$8 sps:$4 sm:$0xff]  }
  0x52   :  { %485 = vmatpush1.bf16.msra.mxu1 %v1187_v39  ;;  %763 = vmatprep.subr.bf16.mxu0 %v1226_v53 }
  0x53   :  { %486 = vmatprep.subr.bf16.mxu1 %v1188_v40 }
  0x55   :  { %764 = vmatpush1.bf16.msra.mxu0 %v1224_v54 }
  0x56   :  { %487 = vmatpush1.bf16.msra.mxu1 %v1190_v41  ;;  %765 = vmatprep.subr.bf16.mxu0 %v1229_v55 }
  0x57   :  { %488 = vmatprep.subr.bf16.mxu1 %v1191_v42 }
  0x59   :  { %766 = vmatpush1.bf16.msra.mxu0 %v1227_v56 }
  0x5a   :  { %489 = vmatpush1.bf16.msra.mxu1 %v1193_v43  ;;  %767 = vmatprep.subr.bf16.mxu0 %v1232_v57 }
  0x5b   :  { %490 = vmatprep.subr.bf16.mxu1 %v1194_v44 }
  0x5d   :  { %768 = vmatpush1.bf16.msra.mxu0 %v1230_v58 }
  0x5e   :  { %491 = vmatpush1.bf16.msra.mxu1 %v1196_v45  ;;  %769 = vmatprep.subr.bf16.mxu0 %v1235_v59 }
  0x5f   :  { %492 = vmatprep.subr.bf16.mxu1 %v1197_v46 }
  0x61   :  { %770 = vmatpush1.bf16.msra.mxu0 %v1233_v60  ;;  %v1254_v60 = vld [vmem:[%s1598_s9 + $0x40] sm:$0xff]  }
  0x62   :  { %493 = vmatpush1.bf16.msra.mxu1 %v1199_v47  ;;  %771 = vmatprep.subr.bf16.mxu0 %v1238_v61  ;;  %v1255_v61 = vld [vmem:[%s1598_s9] sm:$0xff]  }
  0x63   :  { %494 = vmatprep.subr.bf16.mxu1 %v1200_v48 }
  0x65   :  { %772 = vmatpush1.bf16.msra.mxu0 %v1236_v62  ;;  %v1256_v62 = vld [vmem:[%s1598_s9 + $0x48] sm:$0xff]  }
  0x66   :  { %495 = vmatpush1.bf16.msra.mxu1 %v1202_v49  ;;  %773 = vmatprep.subr.bf16.mxu0 %v1241_v63  ;;  %v1257_v63 = vld [vmem:[%s1598_s9 + $0x8] sm:$0xff]  }
  0x67   :  { %496 = vmatprep.subr.bf16.mxu1 %v1203_v50 }
  0x69   :  { %774 = vmatpush1.bf16.msra.mxu0 %v1239_v0  ;;  %v1258_v0 = vld [vmem:[%s1598_s9 + $0x50] sm:$0xff]  }
  0x6a   :  { %497 = vmatpush1.bf16.msra.mxu1 %v1205_v51  ;;  %775 = vmatprep.subr.bf16.mxu0 %v1244_v1  ;;  %v1259_v1 = vld [vmem:[%s1598_s9 + $0x10] sm:$0xff]  }
  0x6b   :  { %1120 = vmatprep.subr.bf16.mxu1 %v1254_v60 }
  0x6d   :  { %776 = vmatpush1.bf16.msra.mxu0 %v1242_v3  ;;  %v1260_v3 = vld [vmem:[%s1598_s9 + $0x58] sm:$0xff]  }
 0x10f   :  { %v199_v7 = vpop.f32.mrb[0].mxu0 }
 0x110   :  { %v220_v8 = vadd.f32 %v213_v5, %v199_v7  ;;  %v201_v9 = vpop.f32.mrb[1].mxu0  ;;  %v1250_v7 = vld [vmem:[#allocation5 + $0xe4] ss:$8 sps:$4 sm:$0xff]  }
 0x111   :  { %v221_v10 = vadd.f32 %v217_v6, %v201_v9  ;;  %v203_v11 = vpop.f32.mrb[2].mxu0  ;;  %v1253_v9 = vld [vmem:[#allocation5 + $0xf4] ss:$8 sps:$4 sm:$0xff]  }
 0x112   :  { %v224_v12 = vmin.f32 %v220_v8, 20.0  ;;  %v222_v13 = vadd.f32 %v213_v5, %v203_v11  ;;  %v205_v14 = vpop.f32.mrb[3].mxu0  ;;  %v1247_v5 = vld [vmem:[#allocation5 + $0xd4] ss:$8 sps:$4 sm:$0xff]   ;;  %v294_v11 = vld [vmem:[%s1595_s6] sm:$0x3] }
 0x113   :  { %v225_v15 = vmin.f32 %v221_v10, 20.0  ;;  %v223_v16 = vadd.f32 %v217_v6, %v205_v14  ;;  %v1245_v6 = vld [vmem:[#allocation5 + $0xd0] ss:$8 sps:$4 sm:$0xff]   ;;  %777 = vmatprep.subr.bf16.mxu0 %v1247_v5 }
 0x114   :  { %v228_v17 = vmul.f32 1.442695, %v224_v12  ;;  %v226_v18 = vmin.f32 %v222_v13, 20.0  ;;  %778 = vmatpush1.bf16.msra.mxu0 %v1245_v6  ;;  %v299_v12 = vrot.slane %v294_v11, %v1505_v2  ;;  %v1261_v5 = vld [vmem:[%s1598_s9 + $0x18] sm:$0xff]   ;;  %v1262_v6 = vld [vmem:[%s1598_s9 + $0x60] sm:$0xff]  }
 0x115   :  { %v230_v19 = vmul.f32 1.442695, %v225_v15  ;;  %v227_v20 = vmin.f32 %v223_v16, 20.0  ;;  %779 = vmatprep.subr.bf16.mxu0 %v1250_v7  ;;  %v1263_v7 = vld [vmem:[%s1598_s9 + $0x20] sm:$0xff]  }
 0x116   :  { %1270 = vpow2.f32 %v228_v17  ;;  %v232_v21 = vmul.f32 1.442695, %v226_v18 }
 0x117   :  { %1272 = vpow2.f32 %v230_v19  ;;  %v234_v22 = vmul.f32 1.442695, %v227_v20 }
 0x118   :  { %1274 = vpow2.f32 %v232_v21 }
 0x119   :  { %1276 = vpow2.f32 %v234_v22 }
 0x120   :  { %v1271_v23 = vpop.eup %1270 }
 0x121   :  { %v1273_v24 = vpop.eup %1272  ;;  %v236_v25 = vadd.f32 2.0, %v1271_v23 }
 0x122   :  { %v1275_v26 = vpop.eup %1274  ;;  %v237_v27 = vadd.f32 2.0, %v1273_v24 }
 0x123   :  { %v1277_v28 = vpop.eup %1276  ;;  %v240_v29 = vmul.f32 %v1271_v23, %v236_v25  ;;  %v238_v30 = vadd.f32 2.0, %v1275_v26 }
 0x124   :  { %v241_v31 = vmul.f32 %v1273_v24, %v237_v27  ;;  %v239_v32 = vadd.f32 2.0, %v1277_v28 }
 0x125   :  { %v248_v33 = vadd.f32 2.0, %v240_v29  ;;  %v242_v34 = vmul.f32 %v1275_v26, %v238_v30  ;;  %v244_v41 = vmul.f32 %v240_v29, %v220_v8  ;;  %v1248_v8 = vld [vmem:[#allocation5 + $0xe0] ss:$8 sps:$4 sm:$0xff]  }
 0x126   :  { %v249_v35 = vadd.f32 2.0, %v241_v31  ;;  %v243_v36 = vmul.f32 %v1277_v28, %v239_v32  ;;  %v245_v44 = vmul.f32 %v241_v31, %v221_v10  ;;  %780 = vmatpush1.bf16.msra.mxu0 %v1248_v8  ;;  %v1251_v10 = vld [vmem:[#allocation5 + $0xf0] ss:$8 sps:$4 sm:$0xff]   ;;  %v1264_v8 = vld [vmem:[%s1598_s9 + $0x68] sm:$0xff]  }
 0x127   :  { %1278 = vrcp.f32 %v248_v33  ;;  %v250_v37 = vadd.f32 2.0, %v242_v34  ;;  %v246_v42 = vmul.f32 %v242_v34, %v222_v13  ;;  %781 = vmatprep.subr.bf16.mxu0 %v1253_v9  ;;  %v303_v13 = vrot.slane %v294_v11, %v1510_v4  ;;  %v1265_v9 = vld [vmem:[%s1598_s9 + $0x28] sm:$0xff]   ;;  %v1267_v11 = vld [vmem:[%s1598_s9 + $0x30] sm:$0xff]  }
 0x128   :  { %1280 = vrcp.f32 %v249_v35  ;;  %v251_v38 = vadd.f32 2.0, %v243_v36  ;;  %v247_v45 = vmul.f32 %v243_v36, %v223_v16 }
 0x129   :  { %1282 = vrcp.f32 %v250_v37 }
 0x12a   :  { %1284 = vrcp.f32 %v251_v38  ;;  %782 = vmatpush1.bf16.msra.mxu0 %v1251_v10  ;;  %v1266_v10 = vld [vmem:[%s1598_s9 + $0x70] sm:$0xff]  }
 0x131   :  { %v1279_v39 = vpop.eup %1278 }
 0x132   :  { %v1281_v40 = vpop.eup %1280  ;;  %v256_v47 = vmul.f32 %v1279_v39, %v244_v41 }
 0x133   :  { %v1283_v43 = vpop.eup %1282  ;;  %v257_v49 = vmul.f32 %v1281_v40, %v245_v44 }
 0x134   :  { %v1285_v46 = vpop.eup %1284  ;;  %v258_v48 = vmul.f32 %v1283_v43, %v246_v42 }
 0x135   :  { %v259_v50 = vmul.f32 %v1285_v46, %v247_v45 }
 0x136   :  { %v260_v51 = vpack.c.bf16 %v258_v48, %v256_v47 }
 0x137   :  { %v261_v52 = vpack.c.bf16 %v259_v50, %v257_v49 }
 0x139   :  { %498 = vmatprep.mubr.bf16.mxu1 %v261_v52 }
 0x13a   :  { %499 = vmatmul.mubr.bf16.vlgmr.msra.gmra.mrb[0].mxu1 %v260_v51 }
 0x13b   :  { %1121 = vmatpush3.bf16.msra.mxu1 %v1255_v61 }
 0x13c   :  { %1122 = vmatprep.subr.bf16.mxu1 %v1256_v62  ;;  %v1101_v62 = vld [vmem:[%s1599_s10] ss:$0 sm:$0xff] }
 0x13f   :  { %1123 = vmatpush3.bf16.msra.mxu1 %v1257_v63 }
 0x140   :  { %1124 = vmatprep.subr.bf16.mxu1 %v1258_v0 }
 0x143   :  { %1125 = vmatpush3.bf16.msra.mxu1 %v1259_v1 }
 0x144   :  { %1126 = vmatprep.subr.bf16.mxu1 %v1260_v3 }
 0x147   :  { %1127 = vmatpush3.bf16.msra.mxu1 %v1261_v5 }
 0x148   :  { %1128 = vmatprep.subr.bf16.mxu1 %v1262_v6 }
 0x14b   :  { %1129 = vmatpush3.bf16.msra.mxu1 %v1263_v7 }
 0x14c   :  { %1130 = vmatprep.subr.bf16.mxu1 %v1264_v8 }
 0x14f   :  { %1131 = vmatpush3.bf16.msra.mxu1 %v1265_v9 }
 0x150   :  { %1132 = vmatprep.subr.bf16.mxu1 %v1266_v10 }
 0x153   :  { %1133 = vmatpush3.bf16.msra.mxu1 %v1267_v11 }
 0x20d   :  { %v500_v14 = vpop.f32.mrb[0].mxu1 }
 0x20e   :  { %v501_v15 = vadd.f32 %v500_v14, %v299_v12  ;;  %v502_v16 = vpop.f32.mrb[1].mxu1  ;;  %v579_v14 = vld [vmem:[%s1597_s8] sm:$0x3] }
 0x20f   :  { %v503_v17 = vadd.f32 %v502_v16, %v303_v13  ;;  %v504_v18 = vpop.f32.mrb[2].mxu1  ;;  %v588_v16 = vrot.slane %v579_v14, %v1510_v4 }
 0x210   :  { %v509_v19 = vmin.f32 %v501_v15, 20.0  ;;  %v505_v20 = vadd.f32 %v504_v18, %v299_v12  ;;  %v506_v21 = vpop.f32.mrb[3].mxu1  ;;  %v1268_v12 = vld [vmem:[%s1598_s9 + $0x78] sm:$0xff]  }
 0x211   :  { %v510_v22 = vmin.f32 %v503_v17, 20.0  ;;  %v507_v23 = vadd.f32 %v506_v21, %v303_v13  ;;  %v1269_v13 = vld [vmem:[%s1598_s9 + $0x38] sm:$0xff]   ;;  %1134 = vmatprep.subr.bf16.mxu1 %v1268_v12 }
 0x212   :  { %v513_v24 = vmul.f32 1.442695, %v509_v19  ;;  %v511_v25 = vmin.f32 %v505_v20, 20.0  ;;  %1135 = vmatpush3.bf16.msra.mxu1 %v1269_v13 }
 0x213   :  { %v515_v26 = vmul.f32 1.442695, %v510_v22  ;;  %v512_v27 = vmin.f32 %v507_v23, 20.0 }
 0x214   :  { %1286 = vpow2.f32 %v513_v24  ;;  %v517_v28 = vmul.f32 1.442695, %v511_v25 }
 0x215   :  { %1288 = vpow2.f32 %v515_v26  ;;  %v519_v29 = vmul.f32 1.442695, %v512_v27 }
 0x216   :  { %1290 = vpow2.f32 %v517_v28 }
 0x217   :  { %1292 = vpow2.f32 %v519_v29 }
 0x21e   :  { %v1287_v30 = vpop.eup %1286 }
 0x21f   :  { %v1289_v31 = vpop.eup %1288  ;;  %v521_v32 = vadd.f32 2.0, %v1287_v30 }
 0x220   :  { %v1291_v33 = vpop.eup %1290  ;;  %v522_v34 = vadd.f32 2.0, %v1289_v31 }
 0x221   :  { %v1293_v35 = vpop.eup %1292  ;;  %v525_v36 = vmul.f32 %v1287_v30, %v521_v32  ;;  %v523_v37 = vadd.f32 2.0, %v1291_v33 }
 0x222   :  { %v526_v38 = vmul.f32 %v1289_v31, %v522_v34  ;;  %v524_v39 = vadd.f32 2.0, %v1293_v35 }
 0x223   :  { %v533_v40 = vadd.f32 2.0, %v525_v36  ;;  %v527_v41 = vmul.f32 %v1291_v33, %v523_v37  ;;  %v529_v48 = vmul.f32 %v525_v36, %v501_v15  ;;  %v584_v15 = vrot.slane %v579_v14, %v1505_v2 }
 0x224   :  { %v534_v42 = vadd.f32 2.0, %v526_v38  ;;  %v528_v43 = vmul.f32 %v1293_v35, %v524_v39  ;;  %v530_v51 = vmul.f32 %v526_v38, %v503_v17 }
 0x225   :  { %1294 = vrcp.f32 %v533_v40  ;;  %v535_v44 = vadd.f32 2.0, %v527_v41  ;;  %v531_v49 = vmul.f32 %v527_v41, %v505_v20 }
 0x226   :  { %1296 = vrcp.f32 %v534_v42  ;;  %v536_v45 = vadd.f32 2.0, %v528_v43  ;;  %v532_v52 = vmul.f32 %v528_v43, %v507_v23 }
 0x227   :  { %1298 = vrcp.f32 %v535_v44 }
 0x228   :  { %1300 = vrcp.f32 %v536_v45 }
 0x22f   :  { %v1295_v46 = vpop.eup %1294 }
 0x230   :  { %v1297_v47 = vpop.eup %1296  ;;  %v541_v54 = vmul.f32 %v1295_v46, %v529_v48 }
 0x231   :  { %v1299_v50 = vpop.eup %1298  ;;  %v542_v56 = vmul.f32 %v1297_v47, %v530_v51 }
 0x232   :  { %v1301_v53 = vpop.eup %1300  ;;  %v543_v55 = vmul.f32 %v1299_v50, %v531_v49 }
 0x233   :  { %v544_v57 = vmul.f32 %v1301_v53, %v532_v52 }
 0x234   :  { %v545_v58 = vpack.c.bf16 %v543_v55, %v541_v54 }
 0x235   :  { %v546_v59 = vpack.c.bf16 %v544_v57, %v542_v56 }
 0x237   :  { %783 = vmatprep.mubr.bf16.mxu0 %v546_v59 }
 0x238   :  { %784 = vmatmul.mubr.bf16.vlgmr.msra.gmra.mrb[4].mxu0 %v545_v58 }
 0x30b   :  { %v785_v17 = vpop.f32.mrb[4].mxu0 }
 0x30c   :  { %v786_v18 = vadd.f32 %v785_v17, %v584_v15  ;;  %v787_v19 = vpop.f32.mrb[5].mxu0 }
 0x30d   :  { %v788_v20 = vadd.f32 %v787_v19, %v588_v16  ;;  %v789_v21 = vpop.f32.mrb[6].mxu0 }
 0x30e   :  { %v794_v22 = vmin.f32 %v786_v18, 20.0  ;;  %v790_v23 = vadd.f32 %v789_v21, %v584_v15  ;;  %v791_v24 = vpop.f32.mrb[7].mxu0 }
 0x30f   :  { %v795_v25 = vmin.f32 %v788_v20, 20.0  ;;  %v792_v26 = vadd.f32 %v791_v24, %v588_v16 }
 0x310   :  { %v798_v27 = vmul.f32 1.442695, %v794_v22  ;;  %v796_v28 = vmin.f32 %v790_v23, 20.0 }
 0x311   :  { %v800_v29 = vmul.f32 1.442695, %v795_v25  ;;  %v797_v30 = vmin.f32 %v792_v26, 20.0 }
 0x312   :  { %1302 = vpow2.f32 %v798_v27  ;;  %v802_v31 = vmul.f32 1.442695, %v796_v28 }
 0x313   :  { %1304 = vpow2.f32 %v800_v29  ;;  %v804_v2 = vmul.f32 1.442695, %v797_v30 }
 0x314   :  { %1306 = vpow2.f32 %v802_v31 }
 0x315   :  { %1308 = vpow2.f32 %v804_v2 }
 0x31c   :  { %v1303_v4 = vpop.eup %1302 }
 0x31d   :  { %v1305_v32 = vpop.eup %1304  ;;  %v806_v33 = vadd.f32 2.0, %v1303_v4 }
 0x31e   :  { %v1307_v34 = vpop.eup %1306  ;;  %v807_v35 = vadd.f32 2.0, %v1305_v32 }
 0x31f   :  { %v1309_v36 = vpop.eup %1308  ;;  %v810_v37 = vmul.f32 %v1303_v4, %v806_v33  ;;  %v808_v38 = vadd.f32 2.0, %v1307_v34 }
 0x320   :  { %v811_v39 = vmul.f32 %v1305_v32, %v807_v35  ;;  %v809_v40 = vadd.f32 2.0, %v1309_v36 }
 0x321   :  { %v818_v41 = vadd.f32 2.0, %v810_v37  ;;  %v812_v42 = vmul.f32 %v1307_v34, %v808_v38  ;;  %v814_v49 = vmul.f32 %v810_v37, %v786_v18 }
 0x322   :  { %v819_v43 = vadd.f32 2.0, %v811_v39  ;;  %v813_v44 = vmul.f32 %v1309_v36, %v809_v40  ;;  %v815_v52 = vmul.f32 %v811_v39, %v788_v20 }
 0x323   :  { %1310 = vrcp.f32 %v818_v41  ;;  %v820_v45 = vadd.f32 2.0, %v812_v42  ;;  %v816_v50 = vmul.f32 %v812_v42, %v790_v23 }
 0x324   :  { %1312 = vrcp.f32 %v819_v43  ;;  %v821_v46 = vadd.f32 2.0, %v813_v44  ;;  %v817_v53 = vmul.f32 %v813_v44, %v792_v26 }
 0x325   :  { %1314 = vrcp.f32 %v820_v45 }
 0x326   :  { %1316 = vrcp.f32 %v821_v46 }
 0x32d   :  { %v1311_v47 = vpop.eup %1310 }
 0x32e   :  { %v1313_v48 = vpop.eup %1312  ;;  %v826_v55 = vmul.f32 %v1311_v47, %v814_v49 }
 0x32f   :  { %v1315_v51 = vpop.eup %1314  ;;  %v827_v57 = vmul.f32 %v1313_v48, %v815_v52 }
 0x330   :  { %v1317_v54 = vpop.eup %1316  ;;  %v828_v56 = vmul.f32 %v1315_v51, %v816_v50 }
 0x331   :  { %v829_v58 = vmul.f32 %v1317_v54, %v817_v53 }
 0x332   :  { %v830_v59 = vpack.c.bf16 %v828_v56, %v826_v55 }
 0x333   :  { %v831_v60 = vpack.c.bf16 %v829_v58, %v827_v57 }
 0x335   :  { %999 = vmatprep.mubr.bf16.mxu1 %v831_v60 }
 0x336   :  { %1000 = vmatmul.mubr.bf16.vlgmr.msra.gmra.mrb[4].mxu1 %v830_v59 }
 0x409   :  { %v1136_v61 = vpop.f32.mrb[4].mxu1 }
 0x40a   :  { %v1137_v63 = vpop.f32.mrb[5].mxu1 }
 0x40b   :  { %v1138_v0 = vadd.f32 %v1137_v63, %v1136_v61  ;;  %v1139_v1 = vpop.f32.mrb[6].mxu1 }
 0x40c   :  { %v1140_v3 = vpop.f32.mrb[7].mxu1 }
 0x40d   :  { %v1002_v5 = vadd.f32 %v1138_v0, %v1101_v62  ;;  %v1141_v6 = vadd.f32 %v1140_v3, %v1139_v1 }
 0x40f   :  { %v1118_v7 = vclamps-f32 %v1002_v5, 1.0  ;;  %v1005_v8 = vadd.f32 %v1141_v6, %v1101_v62 }
 0x411   :  { %1012 = vst.msk [vmem:[#allocation7] sm:$0xff] %vm86_vm4, %v1118_v7  ;;  %v1119_v9 = vclamps-f32 %v1005_v8, 1.0 }
 0x413   :  { %1013 = vst.msk [vmem:[#allocation7 + $0x8] sm:$0xff] %vm86_vm4, %v1119_v9 }
 0x414   :  { %1018 = vsyncadd [#allocation4], 192  ;;  %s1396_s5 = smov [#allocation7]  }
 0x415   :  { %s1019_s18 = sshll.u32 %s1396_s5, 4  ;;  %s1020_s18 = int_to_ptr.vmem [resolvable:$true] %s1019_s18 }
 0x416   :  { %s1362_s23 = scalar_lea.vmem %s1020_s18, 64  ;;  %s1366_s10 = scalar_lea.vmem %s1020_s18, 256 }
 0x417   :  { %p1363_p2 = scmp.ne.s32.totalorder %s1020_s18, %s1362_s23  ;;  %p1367_p3 = scmp.lt.s32.totalorder %s1020_s18, %s1020_s18 }
 0x418   :  { %p1368_p4 = scmp.lt.s32.totalorder %s1366_s10, %s1362_s23 }
 0x41a   :  { %p1369_p5 = por %p1368_p4, %p1367_p3 }
 0x41c   :  { %p1370_p6 = pnand %p1369_p5, %p1363_p2 }
 0x41e   :  { %1373 = shalt.err (!%p1370_p6)
}
 0x41f   :  { %s1374_s7 = scalar_lea.hbm %s1600_s11, 64 }
 0x420   :  { %p1375_p7 = scmp.ne.s32.totalorder %s1600_s11, %s1374_s7  ;;  %p1378_p8 = scmp.lt.u32.totalorder %s1374_s7, %s1600_s11 }
 0x422   :  { %p1380_p9 = pnand %p1378_p8, %p1375_p7 }
 0x424   :  { %1383 = shalt.err (!%p1380_p9)
}
 0x425   :  { %s1397_s30 = smov 64   ;;  %s1398_s12 = smov 4  }
 0x426   :  { %1025 = dma.vmem_to_hbm [thread:$0]  %s1020_s18, 64, %s1600_s11, [#allocation4], %s1397_s30, %s1397_s30, %s1398_s12  }
 0x427   :  { %1388 = dma.done.wait [#allocation4], 256  }
 0x428   :  { %1389 = vsyncadd [#allocation4], 4294967040 }
 0x429   :  { %1029 = vsyncpa [#allocation3], 1 }
 0x42a   :  { %1030 = vsyncpa [#allocation6], 1 }
 0x42b   :  { %1031 = vsyncpa [#allocation4], 1 }

</bundles_post_ra>
